<compile_context>
chip_gen: v5e
topology: v5e:2x2
jax: 0.10.0
libtpu: 0.0.40
codegen_flags: <defaults>
</compile_context>

<pallas_src>
import functools

import jax
import jax.numpy as jnp
from jax.experimental import pallas as pl
from jax.experimental.pallas import tpu as pltpu

LANE = 128      # TPU lane width
SUBLANE = 8     # TPU sublane width


def _round_up(x, m):
    return ((x + m - 1) // m) * m


def _default_block_b():
    """Generation-aware batch tile: 256 for v7x (2 TCs, 64 MiB VMEM), 512 otherwise."""
    try:
        info = pltpu.get_tpu_info()
        vmem = getattr(info, "vmem_capacity_bytes", None)
        if vmem is not None and vmem <= (64 << 20):
            return 256
        return 512
    except Exception:
        return 256  # safe everywhere: fills MXU M and allows multi-core sharding


# ----------------------------- Pallas kernel --------------------------------
def _phi_kernel(num_hidden_layers, z_dim, compute_dtype, *refs):
    """refs = (x, W0, b0, [W, b]*, Wz, bz, running_mean, out).

    All feature dims (hidden / z) are pre-padded to 128 lanes with zeros, so the
    math below is lane-dense and the zero lanes stay exactly zero throughout.
    """
    x_ref = refs[0]
    out_ref = refs[-1]
    mean_ref = refs[-2]
    prm = refs[1:-2]

    # First layer: single fused matmul over K = H*(G+A) (padded to sublane mult.)
    h = jnp.dot(x_ref[...], prm[0][...], preferred_element_type=jnp.float32) + prm[1][...]
    h = jnp.maximum(h, 0.0)

    idx = 2
    for _ in range(num_hidden_layers - 1):
        w = prm[idx][...]
        b = prm[idx + 1][...]
        idx += 2
        h = jnp.dot(h.astype(compute_dtype), w, preferred_element_type=jnp.float32) + b
        h = jnp.maximum(h, 0.0)

    wz = prm[idx][...]
    bz = prm[idx + 1][...]
    z = jnp.dot(h.astype(compute_dtype), wz, preferred_element_type=jnp.float32) + bz

    # sqrt(Z) * L2-normalize(z, dim=-1), torch eps = 1e-12.
    # rsqrt(max(ss, eps^2)) == 1 / max(||z||, eps); rsqrt goes to the EUP slot.
    ss = jnp.sum(z * z, axis=-1, keepdims=True)
    inv_norm = jax.lax.rsqrt(jnp.maximum(ss, jnp.float32(1e-24)))
    z = z * (jnp.sqrt(jnp.float32(z_dim)) * inv_norm)

    out_ref[...] = (z - mean_ref[...]).astype(out_ref.dtype)


# -------------------------------- wrapper ------------------------------------
def recurrent_hilp_forward(goal, action, params, running_mean, *,
                           max_block_b=None, use_bf16=True):
    """goal: [B, H, G], action: [B, H, A]  ->  phi: [B, Z]."""
    B, H, G = goal.shape
    A = action.shape[-1]
    hidden = params[0][0].shape[1]
    z_dim = params[-1][0].shape[1]
    num_hidden = len(params) - 1
    assert num_hidden >= 1, "expect at least one hidden layer + output projection"

    if max_block_b is None:
        max_block_b = _default_block_b()
    max_block_b = max(SUBLANE, (max_block_b // SUBLANE) * SUBLANE)

    compute_dtype = jnp.bfloat16 if use_bf16 else jnp.float32

    Hp = _round_up(hidden, LANE)       # lane-padded hidden width
    Zp = _round_up(z_dim, LANE)        # lane-padded z width
    Kx = H * (G + A)                   # first-layer contraction dim
    Kxp = _round_up(Kx, SUBLANE)

    # ---- build x = flatten(concat([goal, action], -1)); tiny K, fuses with the cast.
    x = jnp.concatenate([goal, action], axis=-1).reshape(B, Kx)
    if Kxp != Kx:
        x = jnp.pad(x, ((0, 0), (0, Kxp - Kx)))
    x = x.astype(compute_dtype)

    # ---- lane/sublane-padded weights (bf16 by default) and f32 biases / mean.
    def pad_w(w, rows, cols):
        w = w.astype(jnp.float32)
        w = jnp.pad(w, ((0, rows - w.shape[0]), (0, cols - w.shape[1])))
        return w.astype(compute_dtype)

    def pad_b(b, cols):  # biases / mean stay f32 (epilogue precision)
        b = b.reshape(1, -1).astype(jnp.float32)
        return jnp.pad(b, ((0, 0), (0, cols - b.shape[-1])))

    weight_arrays = [pad_w(params[0][0], Kxp, Hp), pad_b(params[0][1], Hp)]
    for (w, b) in params[1:-1]:
        weight_arrays += [pad_w(w, Hp, Hp), pad_b(b, Hp)]
    weight_arrays += [pad_w(params[-1][0], Hp, Zp), pad_b(params[-1][1], Zp)]
    mean_p = pad_b(running_mean, Zp)

    # ---- batch tiling: single full-batch block when it fits; otherwise prefer a
    # multiple-of-8 tile that divides B (no wrapper-side batch pad); pad only as
    # a last resort.
    if B <= max_block_b:
        block_b, B_pad = B, B
    else:
        block_b = None
        for cand in range(max_block_b, SUBLANE - 1, -SUBLANE):
            if B % cand == 0:
                block_b = cand
                break
        if block_b is None:
            block_b = max_block_b
            B_pad = _round_up(B, block_b)
            x = jnp.pad(x, ((0, B_pad - B), (0, 0)))
        else:
            B_pad = B
    num_blocks = B_pad // block_b
    grid = (num_blocks,)

    # Constant-index-map operands: single-buffer them on the multi-step grid
    # (block index never changes, double-buffering would just waste VMEM).
    const_kwargs = {"pipeline_mode": pl.Buffered(1)} if num_blocks > 1 else {}

    in_specs = [pl.BlockSpec((block_b, Kxp), lambda i: (i, 0))]
    for arr in weight_arrays:
        in_specs.append(pl.BlockSpec(arr.shape, lambda i: (0, 0), **const_kwargs))
    in_specs.append(pl.BlockSpec(mean_p.shape, lambda i: (0, 0), **const_kwargs))

    # ---- VMEM budget (caps at 64 MiB so it is legal on every generation).
    weight_bytes = sum(int(a.size) * a.dtype.itemsize for a in weight_arrays)
    weight_bytes += int(mean_p.size) * mean_p.dtype.itemsize
    in_block_bytes = block_b * Kxp * x.dtype.itemsize
    out_block_bytes = block_b * Zp * 4
    act_bytes = block_b * Hp * 4
    resident = weight_bytes + 2 * in_block_bytes + 2 * out_block_bytes + 4 * act_bytes
    vmem_limit = int(min(max(2 * resident + (8 << 20), 32 << 20), 64 << 20))

    # ---- cost estimate so XLA schedules the call sensibly around wrapper ops.
    flops = 2 * B_pad * (Kxp * Hp + (num_hidden - 1) * Hp * Hp + Hp * Zp)
    bytes_accessed = (int(x.size) * x.dtype.itemsize + weight_bytes + B_pad * Zp * 4)
    cost = pl.CostEstimate(flops=int(flops), transcendentals=int(B_pad),
                           bytes_accessed=int(bytes_accessed))

    kernel = functools.partial(_phi_kernel, num_hidden, z_dim, compute_dtype)

    out_padded = pl.pallas_call(
        kernel,
        out_shape=jax.ShapeDtypeStruct((B_pad, Zp), jnp.float32),
        grid=grid,
        in_specs=in_specs,
        out_specs=pl.BlockSpec((block_b, Zp), lambda i: (i, 0)),
        compiler_params=pltpu.CompilerParams(
            dimension_semantics=("parallel",),
            vmem_limit_bytes=vmem_limit),
        cost_estimate=cost,
    )(x, *weight_arrays, mean_p)

    return out_padded[:B, :z_dim]


# -------------------------- parameter construction --------------------------
def init_params(key, goal_dim, action_dim, history_len, hidden_dim, z_dim,
                num_encoder_layers):
    """Deterministic MLPEncoder params for phi1: list of (W [in,out], b [out])."""
    d_in = (goal_dim + action_dim) * history_len
    dims = [d_in] + [hidden_dim] * num_encoder_layers + [z_dim]
    params = []
    for i in range(len(dims) - 1):
        key, kw, kb = jax.random.split(key, 3)
        fan_in = dims[i]
        scale = 1.0 / jnp.sqrt(jnp.float32(fan_in))
        w = jax.random.uniform(kw, (dims[i], dims[i + 1]), jnp.float32, -scale, scale)
        b = jax.random.uniform(kb, (dims[i + 1],), jnp.float32, -scale, scale)
        params.append((w, b))
    return params


def _reference(goal, action, params, running_mean, z_dim):
    x = jnp.concatenate([goal, action], axis=-1).reshape(goal.shape[0], -1)
    h = x
    for (w, b) in params[:-1]:
        h = jnp.maximum(h @ w + b, 0.0)
    z = h @ params[-1][0] + params[-1][1]
    norm = jnp.maximum(jnp.sqrt(jnp.sum(z * z, axis=-1, keepdims=True)), 1e-12)
    return z * (jnp.sqrt(jnp.float32(z_dim)) / norm) - running_mean


# ---------------------------------- main -------------------------------------
if __name__ == "__main__":
    # small shapes consistent with the module
    B, H, G, A = 16, 4, 6, 2          # batch, history_length, goal_dim, action_dim
    HIDDEN, Z = 32, 8                 # hidden_dimension, z_dimension
    NUM_LAYERS = 2                    # num_encoder_layers

    key = jax.random.PRNGKey(0)
    k_goal, k_act, k_params, k_mean, k_big = jax.random.split(key, 5)

    goal = jax.random.normal(k_goal, (B, H, G), jnp.float32)
    action = jax.random.normal(k_act, (B, H, A), jnp.float32)

    params = init_params(k_params, G, A, H, HIDDEN, Z, NUM_LAYERS)
    running_mean = 0.01 * jax.random.normal(k_mean, (Z,), jnp.float32)

    zref = _reference(goal, action, params, running_mean, Z)

    # 1) default bf16-MXU path (f32 accumulation + f32 epilogue)
    phi = jax.block_until_ready(
        recurrent_hilp_forward(goal, action, params, running_mean))
    assert phi.shape == (B, Z)
    assert jnp.allclose(phi, zref, atol=1e-1, rtol=1e-1)

    # 2) exact f32 path
    phi_f32 = jax.block_until_ready(
        recurrent_hilp_forward(goal, action, params, running_mean, use_bf16=False))
    assert jnp.allclose(phi_f32, zref, atol=1e-5, rtol=1e-5)

    # 3) multi-tile path: divisor tile (no batch pad) + Buffered(1) weights + parallel grid
    Bb = 384
    kg2, ka2 = jax.random.split(k_big)
    goal_b = jax.random.normal(kg2, (Bb, H, G), jnp.float32)
    action_b = jax.random.normal(ka2, (Bb, H, A), jnp.float32)
    zref_b = _reference(goal_b, action_b, params, running_mean, Z)
    phi_b = jax.block_until_ready(
        recurrent_hilp_forward(goal_b, action_b, params, running_mean, max_block_b=192))
    assert phi_b.shape == (Bb, Z)
    assert jnp.allclose(phi_b, zref_b, atol=1e-1, rtol=1e-1)

    # 4) ragged-batch fallback path (tail padding)
    Br = 130
    goal_r, action_r = goal_b[:Br], action_b[:Br]
    zref_r = _reference(goal_r, action_r, params, running_mean, Z)
    phi_r = jax.block_until_ready(
        recurrent_hilp_forward(goal_r, action_r, params, running_mean, max_block_b=64))
    assert phi_r.shape == (Br, Z)
    assert jnp.allclose(phi_r, zref_r, atol=1e-1, rtol=1e-1)

    print("KERNEL_OK")
</pallas_src>

<mosaic_0001>
module attributes {stable_mosaic.version = 11 : i64} {
  func.func @_phi_kernel(%arg0: i32, %arg1: memref<16x32xbf16, #tpu.memory_space<vmem>>, %arg2: memref<32x128xbf16, #tpu.memory_space<vmem>>, %arg3: memref<1x128xf32, #tpu.memory_space<vmem>>, %arg4: memref<128x128xbf16, #tpu.memory_space<vmem>>, %arg5: memref<1x128xf32, #tpu.memory_space<vmem>>, %arg6: memref<128x128xbf16, #tpu.memory_space<vmem>>, %arg7: memref<1x128xf32, #tpu.memory_space<vmem>>, %arg8: memref<1x128xf32, #tpu.memory_space<vmem>>, %arg9: memref<16x128xf32, #tpu.memory_space<vmem>>) attributes {dimension_semantics = [#tpu.dimension_semantics<parallel>], iteration_bounds = array<i64: 1>, scalar_prefetch = 0 : i64, scratch_operands = 0 : i64, tpu.core_type = #tpu.core_type<tc>, window_params = [{transform_indices = @transform_0, window_bounds = array<i64: 16, 32>}, {pipeline_mode = #tpu.pipeline_mode<synchronous>, transform_indices = @transform_1, window_bounds = array<i64: 32, 128>}, {pipeline_mode = #tpu.pipeline_mode<synchronous>, transform_indices = @transform_2, window_bounds = array<i64: 1, 128>}, {pipeline_mode = #tpu.pipeline_mode<synchronous>, transform_indices = @transform_3, window_bounds = array<i64: 128, 128>}, {pipeline_mode = #tpu.pipeline_mode<synchronous>, transform_indices = @transform_4, window_bounds = array<i64: 1, 128>}, {pipeline_mode = #tpu.pipeline_mode<synchronous>, transform_indices = @transform_5, window_bounds = array<i64: 128, 128>}, {pipeline_mode = #tpu.pipeline_mode<synchronous>, transform_indices = @transform_6, window_bounds = array<i64: 1, 128>}, {pipeline_mode = #tpu.pipeline_mode<synchronous>, transform_indices = @transform_7, window_bounds = array<i64: 1, 128>}, {transform_indices = @transform_8, window_bounds = array<i64: 16, 128>}]} {
    %c0 = arith.constant 0 : index
    %c0_0 = arith.constant 0 : index
    %0 = vector.load %arg1[%c0, %c0_0] : memref<16x32xbf16, #tpu.memory_space<vmem>>, vector<16x32xbf16>
    %c0_1 = arith.constant 0 : index
    %c0_2 = arith.constant 0 : index
    %1 = vector.load %arg2[%c0_1, %c0_2] : memref<32x128xbf16, #tpu.memory_space<vmem>>, vector<32x128xbf16>
    %cst = arith.constant dense<0.000000e+00> : vector<16x128xf32>
    %2 = tpu.matmul %0, %1, %cst {dimension_numbers = #tpu.dot_dimension_numbers<[1], [0], [0], [1], [0, 0, 1, 1], [], []>} : vector<16x32xbf16>, vector<32x128xbf16>, vector<16x128xf32> -> vector<16x128xf32>
    %c0_3 = arith.constant 0 : index
    %c0_4 = arith.constant 0 : index
    %3 = vector.load %arg3[%c0_3, %c0_4] : memref<1x128xf32, #tpu.memory_space<vmem>>, vector<1x128xf32>
    %4 = vector.broadcast %3 : vector<1x128xf32> to vector<16x128xf32>
    %5 = arith.addf %2, %4 : vector<16x128xf32>
    %cst_5 = arith.constant 0.000000e+00 : f32
    %6 = vector.broadcast %cst_5 : f32 to vector<16x128xf32>
    %7 = arith.maximumf %5, %6 : vector<16x128xf32>
    %c0_6 = arith.constant 0 : index
    %c0_7 = arith.constant 0 : index
    %8 = vector.load %arg4[%c0_6, %c0_7] : memref<128x128xbf16, #tpu.memory_space<vmem>>, vector<128x128xbf16>
    %c0_8 = arith.constant 0 : index
    %c0_9 = arith.constant 0 : index
    %9 = vector.load %arg5[%c0_8, %c0_9] : memref<1x128xf32, #tpu.memory_space<vmem>>, vector<1x128xf32>
    %10 = arith.truncf %7 : vector<16x128xf32> to vector<16x128xbf16>
    %cst_10 = arith.constant dense<0.000000e+00> : vector<16x128xf32>
    %11 = tpu.matmul %10, %8, %cst_10 {dimension_numbers = #tpu.dot_dimension_numbers<[1], [0], [0], [1], [0, 0, 1, 1], [], []>} : vector<16x128xbf16>, vector<128x128xbf16>, vector<16x128xf32> -> vector<16x128xf32>
    %12 = vector.broadcast %9 : vector<1x128xf32> to vector<16x128xf32>
    %13 = arith.addf %11, %12 : vector<16x128xf32>
    %cst_11 = arith.constant 0.000000e+00 : f32
    %14 = vector.broadcast %cst_11 : f32 to vector<16x128xf32>
    %15 = arith.maximumf %13, %14 : vector<16x128xf32>
    %c0_12 = arith.constant 0 : index
    %c0_13 = arith.constant 0 : index
    %16 = vector.load %arg6[%c0_12, %c0_13] : memref<128x128xbf16, #tpu.memory_space<vmem>>, vector<128x128xbf16>
    %c0_14 = arith.constant 0 : index
    %c0_15 = arith.constant 0 : index
    %17 = vector.load %arg7[%c0_14, %c0_15] : memref<1x128xf32, #tpu.memory_space<vmem>>, vector<1x128xf32>
    %18 = arith.truncf %15 : vector<16x128xf32> to vector<16x128xbf16>
    %cst_16 = arith.constant dense<0.000000e+00> : vector<16x128xf32>
    %19 = tpu.matmul %18, %16, %cst_16 {dimension_numbers = #tpu.dot_dimension_numbers<[1], [0], [0], [1], [0, 0, 1, 1], [], []>} : vector<16x128xbf16>, vector<128x128xbf16>, vector<16x128xf32> -> vector<16x128xf32>
    %20 = vector.broadcast %17 : vector<1x128xf32> to vector<16x128xf32>
    %21 = arith.addf %19, %20 : vector<16x128xf32>
    %22 = arith.mulf %21, %21 : vector<16x128xf32>
    %cst_17 = arith.constant dense<0.000000e+00> : vector<16xf32>
    %23 = vector.multi_reduction <add>, %22, %cst_17 [1] : vector<16x128xf32> to vector<16xf32>
    %24 = vector.shape_cast %23 : vector<16xf32> to vector<16x1xf32>
    %cst_18 = arith.constant 1.000000e-24 : f32
    %25 = vector.broadcast %cst_18 : f32 to vector<16x1xf32>
    %26 = arith.maximumf %24, %25 : vector<16x1xf32>
    %27 = math.rsqrt %26 : vector<16x1xf32>
    %cst_19 = arith.constant 8.000000e+00 : f32
    %28 = math.sqrt %cst_19 : f32
    %29 = vector.broadcast %28 : f32 to vector<16x1xf32>
    %30 = arith.mulf %29, %27 : vector<16x1xf32>
    %31 = vector.broadcast %30 : vector<16x1xf32> to vector<16x128xf32>
    %32 = arith.mulf %21, %31 : vector<16x128xf32>
    %c0_20 = arith.constant 0 : index
    %c0_21 = arith.constant 0 : index
    %33 = vector.load %arg8[%c0_20, %c0_21] : memref<1x128xf32, #tpu.memory_space<vmem>>, vector<1x128xf32>
    %34 = vector.broadcast %33 : vector<1x128xf32> to vector<16x128xf32>
    %35 = arith.subf %32, %34 : vector<16x128xf32>
    %c0_22 = arith.constant 0 : index
    %c0_23 = arith.constant 0 : index
    %36 = vector.load %arg9[%c0_22, %c0_23] : memref<16x128xf32, #tpu.memory_space<vmem>>, vector<16x128xf32>
    tpu.vector_store %arg9[%c0_22, %c0_23], %35 {strides = array<i32>} : memref<16x128xf32, #tpu.memory_space<vmem>>, vector<16x128xf32>,
    return
  }
  func.func @transform_0(%arg0: i32) -> (i32, i32) {
    %c0_i32 = arith.constant 0 : i32
    %c0_i32_0 = arith.constant 0 : i32
    return %arg0, %c0_i32 : i32, i32
  }
  func.func @transform_1(%arg0: i32) -> (i32, i32) {
    %c0_i32 = arith.constant 0 : i32
    %c0_i32_0 = arith.constant 0 : i32
    %c0_i32_1 = arith.constant 0 : i32
    return %c0_i32, %c0_i32_0 : i32, i32
  }
  func.func @transform_2(%arg0: i32) -> (i32, i32) {
    %c0_i32 = arith.constant 0 : i32
    %c0_i32_0 = arith.constant 0 : i32
    %c0_i32_1 = arith.constant 0 : i32
    return %c0_i32, %c0_i32_0 : i32, i32
  }
  func.func @transform_3(%arg0: i32) -> (i32, i32) {
    %c0_i32 = arith.constant 0 : i32
    %c0_i32_0 = arith.constant 0 : i32
    %c0_i32_1 = arith.constant 0 : i32
    return %c0_i32, %c0_i32_0 : i32, i32
  }
  func.func @transform_4(%arg0: i32) -> (i32, i32) {
    %c0_i32 = arith.constant 0 : i32
    %c0_i32_0 = arith.constant 0 : i32
    %c0_i32_1 = arith.constant 0 : i32
    return %c0_i32, %c0_i32_0 : i32, i32
  }
  func.func @transform_5(%arg0: i32) -> (i32, i32) {
    %c0_i32 = arith.constant 0 : i32
    %c0_i32_0 = arith.constant 0 : i32
    %c0_i32_1 = arith.constant 0 : i32
    return %c0_i32, %c0_i32_0 : i32, i32
  }
  func.func @transform_6(%arg0: i32) -> (i32, i32) {
    %c0_i32 = arith.constant 0 : i32
    %c0_i32_0 = arith.constant 0 : i32
    %c0_i32_1 = arith.constant 0 : i32
    return %c0_i32, %c0_i32_0 : i32, i32
  }
  func.func @transform_7(%arg0: i32) -> (i32, i32) {
    %c0_i32 = arith.constant 0 : i32
    %c0_i32_0 = arith.constant 0 : i32
    %c0_i32_1 = arith.constant 0 : i32
    return %c0_i32, %c0_i32_0 : i32, i32
  }
  func.func @transform_8(%arg0: i32) -> (i32, i32) {
    %c0_i32 = arith.constant 0 : i32
    %c0_i32_0 = arith.constant 0 : i32
    return %arg0, %c0_i32 : i32, i32
  }
}

</mosaic_0001>

<bundles_post_ra>
// kernel: tpu_custom_call.1
= control target key start
LH: loop header
LB: loop body
LE: loop exit
PB: predicated region body
PF: predicated region fallthrough
CT: control target
= control target key end

     0   :  { %13 = vsyncpa [#allocation3], 0  ;;  %s692_s0 = inlined_call_operand.hbm [shape: bf16[16,32], index: 0, kind: input, shape index: {}]   ;;  %s693_s1 = inlined_call_operand.hbm [shape: bf16[32,128], index: 1, kind: input, shape index: {}]   ;;  %s694_s2 = inlined_call_operand.vmem [shape: f32[1,128], index: 2, kind: input, shape index: {}]   ;;  %s695_s3 = inlined_call_operand.hbm [shape: bf16[128,128], index: 3, kind: input, shape index: {}]   ;;  %s696_s4 = inlined_call_operand.vmem [shape: f32[1,128], index: 4, kind: input, shape index: {}]   ;;  %s697_s5 = inlined_call_operand.hbm [shape: bf16[128,128], index: 5, kind: input, shape index: {}]   ;;  %s698_s6 = inlined_call_operand.vmem [shape: f32[1,128], index: 6, kind: input, shape index: {}]   ;;  %s699_s7 = inlined_call_operand.vmem [shape: f32[1,128], index: 7, kind: input, shape index: {}]   ;;  %s700_s8 = inlined_call_operand.hbm [shape: f32[16,128], index: 8, kind: output, shape index: {}]  }
   0x1   :  { %14 = vsyncpa [#allocation6], 0 }
   0x2   :  { %15 = vsyncpa [#allocation9], 0 }
   0x3   :  { %16 = vsyncpa [#allocation4], 0  ;;  %s34_s29 = sshll.u32 %s693_s1, 4  ;;  %s611_s30 = smov [#allocation5]   ;;  %s35_s29 = int_to_ptr.hbm [resolvable:$true] %s34_s29 }
   0x4   :  { %s36_s9 = sshll.u32 %s611_s30, 4  ;;  %s21_s12 = sshll.u32 %s692_s0, 4  ;;  %s37_s9 = int_to_ptr.vmem [resolvable:$true] %s36_s9  ;;  %s22_s12 = int_to_ptr.hbm [resolvable:$true] %s21_s12 }
   0x5   :  { %s612_s13 = smov 64   ;;  %s613_s14 = smov 4  }
   0x6   :  { %42 = dma.hbm_to_vmem [thread:$0]  %s35_s29, 256, %s37_s9, [#allocation6], %s612_s13, %s612_s13, %s613_s14  }
   0x7   :  { %s614_s15 = smov [#allocation2]   ;;  %s49_s19 = sshll.u32 %s695_s3, 4  ;;  %s50_s19 = int_to_ptr.hbm [resolvable:$true] %s49_s19 }
   0x8   :  { %s23_s16 = sshll.u32 %s614_s15, 4  ;;  %s64_s21 = sshll.u32 %s697_s5, 4  ;;  %s24_s16 = int_to_ptr.vmem [resolvable:$true] %s23_s16  ;;  %s65_s21 = int_to_ptr.hbm [resolvable:$true] %s64_s21 }
   0x9   :  { %29 = dma.hbm_to_vmem [thread:$0]  %s22_s12, 128, %s24_s16, [#allocation3], %s612_s13, %s612_s13, %s613_s14  }
   0xa   :  { %s615_s22 = smov [#allocation7]   ;;  %s616_s0 = smov [#allocation8]  }
   0xb   :  { %s51_s23 = sshll.u32 %s615_s22, 4  ;;  %s66_s24 = sshll.u32 %s616_s0, 4  ;;  %s52_s23 = int_to_ptr.vmem [resolvable:$true] %s51_s23  ;;  %s67_s24 = int_to_ptr.vmem [resolvable:$true] %s66_s24 }
   0xc   :  { %57 = dma.hbm_to_vmem [thread:$0]  %s50_s19, 1024, %s52_s23, [#allocation6], %s612_s13, %s612_s13, %s613_s14  }
   0xd   :  { %72 = dma.hbm_to_vmem [thread:$0]  %s65_s21, 1024, %s67_s24, [#allocation9], %s612_s13, %s612_s13, %s613_s14  }
   0xe   :  { %603 = dma.done.wait [#allocation3], 128  }
   0xf   :  { %604 = vsyncadd [#allocation3], 4294967168 }
  0x10   :  { %605 = dma.done.wait [#allocation6], 1280  }
  0x11   :  { %606 = vsyncadd [#allocation6], 4294966016 }
  0x12   :  { %607 = dma.done.wait [#allocation9], 1024  }
  0x13   :  { %608 = vsyncadd [#allocation9], 4294966272  ;;  %v449_v0 = vld [vmem:[#allocation5 + $0x8] sm:$0xff]  ;;  %v448_v2 = vld [vmem:[#allocation5] sm:$0xff]  ;;  %vm121_vm0 = vcmask 261120   ;;  %s617_s28 = smov [#allocation10]  }
  0x14   :  { %v457_v1 = vld [vmem:[#allocation7 + $0x38] sm:$0xff]  ;;  %131 = vmatpush.bf16.msra.mxu0 %v449_v0  ;;  %v456_v3 = vld [vmem:[#allocation7 + $0x30] sm:$0xff]  ;;  %v447_v4 = vld [vmem:[#allocation2] sm:$0xff]  ;;  %s353_s29 = sshll.u32 %s617_s28, 4  ;;  %s355_s10 = sshll.u32 %s700_s8, 4  ;;  %s354_s29 = int_to_ptr.vmem [resolvable:$true] %s353_s29  ;;  %s356_s10 = int_to_ptr.hbm [resolvable:$true] %s355_s10 }
  0x15   :  { %210 = vmatpush.bf16.msra.mxu1 %v457_v1  ;;  %v455_v5 = vld [vmem:[#allocation7 + $0x28] sm:$0xff]  ;;  %v454_v6 = vld [vmem:[#allocation7 + $0x20] sm:$0xff]  ;;  %v453_v7 = vld [vmem:[#allocation7 + $0x18] sm:$0xff]  ;;  %s619_s11 = smov 8  }
  0x16   :  { %v452_v8 = vld [vmem:[#allocation7 + $0x10] sm:$0xff]  ;;  %v451_v9 = vld [vmem:[#allocation7 + $0x8] sm:$0xff]  ;;  %v450_v10 = vld [vmem:[#allocation7] sm:$0xff] }
  0x17   :  { %v465_v11 = vld [vmem:[#allocation8 + $0x38] sm:$0xff]  ;;  %v464_v12 = vld [vmem:[#allocation8 + $0x30] sm:$0xff]  ;;  %v463_v13 = vld [vmem:[#allocation8 + $0x28] sm:$0xff] }
  0x18   :  { %132 = vmatpush.bf16.msra.mxu0 %v448_v2  ;;  %295 = vmatpush.bf16.msra.mxu2 %v465_v11  ;;  %v462_v14 = vld [vmem:[#allocation8 + $0x20] sm:$0xff]  ;;  %v475_v16 = vld [vmem:[%s694_s2] ss:$0 sm:$0xff]  ;;  %v461_v23 = vld [vmem:[#allocation8 + $0x18] sm:$0xff] }
  0x19   :  { %211 = vmatpush.bf16.msra.mxu1 %v456_v3  ;;  %v460_v24 = vld [vmem:[#allocation8 + $0x10] sm:$0xff]  ;;  %v459_v25 = vld [vmem:[#allocation8 + $0x8] sm:$0xff]  ;;  %v458_v26 = vld [vmem:[#allocation8] sm:$0xff] }
  0x1a   :  { %v476_v28 = vld [vmem:[%s696_s4] ss:$0 sm:$0xff] }
  0x1b   :  { %382 = vmatmul.msk.bf16.vlgmr.msra.gmra.mxu0 %vm121_vm0, %v447_v4  ;;  %v477_v35 = vld [vmem:[%s698_s6] ss:$0 sm:$0xff] }
  0x1c   :  { %296 = vmatpush.bf16.msra.mxu2 %v464_v12  ;;  %v478_v56 = vld [vmem:[%s699_s7] ss:$0 sm:$0xff]  ;;  %s618_s7 = smov 128  }
  0x1d   :  { %212 = vmatpush.bf16.msra.mxu1 %v455_v5 }
  0x20   :  { %297 = vmatpush.bf16.msra.mxu2 %v463_v13 }
  0x21   :  { %213 = vmatpush.bf16.msra.mxu1 %v454_v6 }
  0x24   :  { %298 = vmatpush.bf16.msra.mxu2 %v462_v14 }
  0x25   :  { %214 = vmatpush.bf16.msra.mxu1 %v453_v7 }
  0x28   :  { %299 = vmatpush.bf16.msra.mxu2 %v461_v23 }
  0x29   :  { %215 = vmatpush.bf16.msra.mxu1 %v452_v8 }
  0x2c   :  { %300 = vmatpush.bf16.msra.mxu2 %v460_v24 }
  0x2d   :  { %216 = vmatpush.bf16.msra.mxu1 %v451_v9 }
  0x30   :  { %301 = vmatpush.bf16.msra.mxu2 %v459_v25 }
  0x31   :  { %217 = vmatpush.bf16.msra.mxu1 %v450_v10 }
  0x34   :  { %302 = vmatpush.bf16.msra.mxu2 %v458_v26 }
  0x98   :  { %v134_v15 = vpop.f32.mrf.mxu0 }
  0x99   :  { %v135_v17 = vadd.f32 %v475_v16, %v134_v15 }
  0x9b   :  { %v139_v20 = vmax.f32 %v135_v17, 0.0 }
  0xa0   :  { %v136_v18 = vpop.f32.mrf.mxu0 }
  0xa1   :  { %v137_v19 = vadd.f32 %v475_v16, %v136_v18 }
  0xa3   :  { %v140_v21 = vmax.f32 %v137_v19, 0.0 }
  0xa5   :  { %v158_v22 = vpack.c.bf16 %v140_v21, %v139_v20 }
  0xa7   :  { %218 = vmatmul.bf16.vlgmr.msra.gmra.mxu1 %v158_v22 }
 0x124   :  { %v219_v27 = vpop.f32.mrf.mxu1 }
 0x125   :  { %v220_v29 = vadd.f32 %v476_v28, %v219_v27 }
 0x127   :  { %v224_v32 = vmax.f32 %v220_v29, 0.0 }
 0x12c   :  { %v221_v30 = vpop.f32.mrf.mxu1 }
 0x12d   :  { %v222_v31 = vadd.f32 %v476_v28, %v221_v30 }
 0x12f   :  { %v225_v33 = vmax.f32 %v222_v31, 0.0 }
 0x131   :  { %v243_v34 = vpack.c.bf16 %v225_v33, %v224_v32 }
 0x133   :  { %303 = vmatmul.bf16.vlgmr.msra.gmra.mxu2 %v243_v34 }
 0x1b6   :  { %v304_v36 = vpop.f32.mrf.mxu2 }
 0x1b7   :  { %v305_v37 = vadd.f32 %v477_v35, %v304_v36 }
 0x1b9   :  { %v309_v38 = vmul.f32 %v305_v37, %v305_v37 }
 0x1bb   :  { %311 = vadd.xlane.f32.xlu0 %v309_v38 }
 0x1be   :  { %v306_v39 = vpop.f32.mrf.mxu2 }
 0x1bf   :  { %v307_v40 = vadd.f32 %v477_v35, %v306_v39 }
 0x1c1   :  { %v310_v41 = vmul.f32 %v307_v40, %v307_v40 }
 0x1c3   :  { %313 = vadd.xlane.f32.xlu0 %v310_v41 }
 0x22e   :  { %v312_v42 = vpop.xlane.xlu0 %311 }
 0x22f   :  { %v315_v43 = vmax.f32 %v312_v42, 1e-24 }
 0x231   :  { %479 = vrsqrt.f32 %v315_v43  ;;  %vm323_vm2 = vweird.f32 %v315_v43 }
 0x236   :  { %v314_v44 = vpop.xlane.xlu0 %313 }
 0x237   :  { %v480_v45 = vpop.eup %479  ;;  %v316_v46 = vmax.f32 %v314_v44, 1e-24 }
 0x238   :  { %v318_v47 = vmul.f32 %v480_v45, %v315_v43  ;;  %vm324_vm1 = vweird.f32 %v480_v45 }
 0x239   :  { %481 = vrsqrt.f32 %v316_v46  ;;  %vm325_vm3 = vmor %vm323_vm2, %vm324_vm1  ;;  %vm333_vm5 = vweird.f32 %v316_v46 }
 0x23a   :  { %v319_v48 = vmul.f32 %v480_v45, %v318_v47 }
 0x23c   :  { %v320_v49 = vmul.f32 0.5, %v319_v48 }
 0x23e   :  { %v321_v50 = vsub.f32 1.5, %v320_v49 }
 0x23f   :  { %v482_v51 = vpop.eup %481 }
 0x240   :  { %v322_v52 = vmul.f32 %v480_v45, %v321_v50  ;;  %v328_v53 = vmul.f32 %v482_v51, %v316_v46  ;;  %vm334_vm4 = vweird.f32 %v482_v51 }
 0x241   :  { %vm335_vm6 = vmor %vm333_vm5, %vm334_vm4 }
 0x242   :  { %v326_v54 = vsel %vm325_vm3, %v480_v45, %v322_v52  ;;  %v329_v55 = vmul.f32 %v482_v51, %v328_v53 }
 0x243   :  { %v337_v57 = vmul.f32 2.828427, %v326_v54 }
 0x244   :  { %v330_v58 = vmul.f32 0.5, %v329_v55 }
 0x245   :  { %v339_v59 = vmul.f32 %v337_v57, %v305_v37 }
 0x246   :  { %v331_v60 = vsub.f32 1.5, %v330_v58 }
 0x247   :  { %v345_v61 = vsub.f32 %v339_v59, %v478_v56 }
 0x248   :  { %v332_v62 = vmul.f32 %v482_v51, %v331_v60 }
 0x249   :  { %347 = vst [vmem:[#allocation10] sm:$0xff] %v345_v61 }
 0x24a   :  { %v336_v63 = vsel %vm335_vm6, %v482_v51, %v332_v62 }
 0x24b   :  { %v338_v0 = vmul.f32 2.828427, %v336_v63 }
 0x24d   :  { %v340_v1 = vmul.f32 %v338_v0, %v307_v40 }
 0x24f   :  { %v346_v2 = vsub.f32 %v340_v1, %v478_v56 }
 0x251   :  { %348 = vst [vmem:[#allocation10 + $0x8] sm:$0xff] %v346_v2 }
 0x252   :  { %361 = dma.vmem_to_hbm [thread:$0]  %s354_s29, 256, %s356_s10, [#allocation4], %s618_s7, %s618_s7, %s619_s11  }
 0x253   :  { %609 = dma.done.wait [#allocation4], 256  }
 0x254   :  { %610 = vsyncadd [#allocation4], 4294967040 }
 0x255   :  { %366 = vsyncpa [#allocation3], 1 }
 0x256   :  { %367 = vsyncpa [#allocation6], 1 }
 0x257   :  { %368 = vsyncpa [#allocation9], 1 }
 0x258   :  { %369 = vsyncpa [#allocation4], 1 }

</bundles_post_ra>
